<compile_context>
chip_gen: v7x
topology: tpu7x:2x2x1
jax: 0.10.0
libtpu: 0.0.40
codegen_flags: <defaults>
</compile_context>

<pallas_src>
import functools

import numpy as np
import jax
import jax.numpy as jnp
from jax.experimental import pallas as pl
from jax.experimental.pallas import tpu as pltpu

_EPS = 1e-5  # PyTorch InstanceNorm2d default


def _convblock_kernel(x_ref, masks_ref, w1_ref, b1_ref, w2_ref, b2_ref, o_ref,
                      *, H, W):
    # x_ref    : (1, Cin, P)     P = H*W, spatial flattened on the lane axis
    # masks_ref: (9, P)          precomputed border masks, tap t = kh*3 + kw
    # w1_ref   : (C1, 9*Cin)     im2col-folded weights (pre-transposed)
    # b1_ref   : (C1, 1)
    # w2_ref   : (C2, 9*C1)
    # b2_ref   : (C2, 1)
    # o_ref    : (1, C2, P)
    P = H * W
    f32 = jnp.float32

    masks = masks_ref[...].astype(f32)            # (9, P)

    def conv3x3(x, w_t_ref, b_ref):
        # x: (C_in, P) -> (C_out, P) f32.  Shift via circular lane roll; the
        # wrap-around / out-of-image taps are zeroed by the border masks
        # (implicit zero padding of the original conv).
        cols = []
        for kh in range(3):
            for kw in range(3):
                t = kh * 3 + kw
                off = (kh - 1) * W + (kw - 1)
                shifted = x if off == 0 else pltpu.roll(
                    x, shift=(-off) % P, axis=1)
                if kh == 1 and kw == 1:
                    cols.append(shifted)          # center tap mask is all ones
                else:
                    cols.append(shifted * masks[t:t + 1, :])
        xcol = jnp.concatenate(cols, axis=0)      # (9*C_in, P)
        y = jnp.dot(w_t_ref[...], xcol, preferred_element_type=f32)
        return y + b_ref[...]

    inv_p = 1.0 / float(P)

    def inorm_relu(y):
        # InstanceNorm2d (no affine, biased variance) fused with ReLU.
        mean = jnp.sum(y, axis=1, keepdims=True) * inv_p
        ex2 = jnp.sum(y * y, axis=1, keepdims=True) * inv_p
        var = ex2 - mean * mean
        return jnp.maximum((y - mean) * jax.lax.rsqrt(var + _EPS), 0.0)

    x0 = x_ref[0].astype(f32)                       # (Cin, P)
    x1 = inorm_relu(conv3x3(x0, w1_ref, b1_ref))    # (C1, P)
    # Dropout2d is identity in eval mode.
    # TODO(synk): training-mode channel dropout (needs per-(n,c) RNG mask).
    x2 = inorm_relu(conv3x3(x1, w2_ref, b2_ref))    # (C2, P)
    o_ref[0] = x2.astype(o_ref.dtype)


@jax.jit
def convblock_forward(x_nchw, w1, b1, w2, b2):
    """ConvBlock.forward (variant=None). x_nchw: (N, Cin, H, W) float32."""
    # TODO(synk): 'dense'/'res' variants only add a channel concat of kernel
    # outputs in this wrapper; not implemented for the default variant.
    N, Cin, H, W = x_nchw.shape
    KH, KW, _, C1 = w1.shape
    C2 = w2.shape[3]
    P = H * W

    # Free reshapes: spatial on the lane axis, channels on sublanes.
    x_flat = x_nchw.reshape(N, Cin, P)
    # im2col weight folding: row index = (kh*KW + kw)*Cin + cin.
    w1_t = w1.reshape(KH * KW * Cin, C1).T          # (C1, 9*Cin)
    w2_t = w2.reshape(KH * KW * C1, C2).T           # (C2, 9*C1)
    b1_2d = b1.reshape(C1, 1)
    b2_2d = b2.reshape(C2, 1)

    # Border tap masks: trace-time numpy constants (only depend on H, W).
    h_id = np.arange(P, dtype=np.int64) // W
    w_id = np.arange(P, dtype=np.int64) % W
    hm = [h_id >= 1, np.ones(P, dtype=bool), h_id <= H - 2]
    wm = [w_id >= 1, np.ones(P, dtype=bool), w_id <= W - 2]
    masks_np = np.stack(
        [(hm[kh] & wm[kw]).astype(np.float32)
         for kh in range(3) for kw in range(3)], axis=0)     # (9, P)
    masks = jnp.asarray(masks_np)

    kernel = functools.partial(_convblock_kernel, H=H, W=W)

    out_flat = pl.pallas_call(
        kernel,
        out_shape=jax.ShapeDtypeStruct((N, C2, P), jnp.float32),
        grid_spec=pltpu.PrefetchScalarGridSpec(
            num_scalar_prefetch=0,
            grid=(N,),
            in_specs=[
                pl.BlockSpec((1, Cin, P), lambda n: (n, 0, 0)),
                pl.BlockSpec((9, P), lambda n: (0, 0)),
                pl.BlockSpec((C1, KH * KW * Cin), lambda n: (0, 0)),
                pl.BlockSpec((C1, 1), lambda n: (0, 0)),
                pl.BlockSpec((C2, KH * KW * C1), lambda n: (0, 0)),
                pl.BlockSpec((C2, 1), lambda n: (0, 0)),
            ],
            out_specs=pl.BlockSpec((1, C2, P), lambda n: (n, 0, 0)),
        ),
        compiler_params=pltpu.CompilerParams(
            dimension_semantics=("parallel",)),
    )(x_flat, masks, w1_t, b1_2d, w2_t, b2_2d)

    return out_flat.reshape(N, C2, H, W)


def _reference_convblock(x_nchw, w1, b1, w2, b2):
    """Pure-JAX reference (lax conv) matching the PyTorch forward."""
    def conv(x, w, b):
        w_oihw = jnp.transpose(w, (3, 2, 0, 1))
        y = jax.lax.conv_general_dilated(
            x, w_oihw, window_strides=(1, 1), padding=((1, 1), (1, 1)),
            dimension_numbers=("NCHW", "OIHW", "NCHW"))
        return y + b.reshape(1, -1, 1, 1)

    def in_relu(y):
        mean = y.mean(axis=(2, 3), keepdims=True)
        var = ((y - mean) ** 2).mean(axis=(2, 3), keepdims=True)
        return jnp.maximum((y - mean) * jax.lax.rsqrt(var + _EPS), 0.0)

    x1 = in_relu(conv(x_nchw, w1, b1))
    x2 = in_relu(conv(x1, w2, b2))
    return x2


if __name__ == "__main__":
    # ConvBlock(in_chans=4, out_chans=8, drop_prob=0.1, variant=None, ks=3, pad=1)
    N, Cin, H, W = 2, 4, 16, 16
    Cout = 8
    C1, C2 = Cout, Cout  # variant=None -> out_chans1 == out_chans2 == out_chans

    key = jax.random.PRNGKey(0)
    kx, kw1, kb1, kw2, kb2 = jax.random.split(key, 5)
    x = jax.random.normal(kx, (N, Cin, H, W), jnp.float32)
    # deterministic synthetic weights (shapes from nn.Conv2d(in, out, 3, pad=1))
    w1 = 0.1 * jax.random.normal(kw1, (3, 3, Cin, C1), jnp.float32)   # HWIO
    b1 = 0.1 * jax.random.normal(kb1, (C1,), jnp.float32)
    w2 = 0.1 * jax.random.normal(kw2, (3, 3, C1, C2), jnp.float32)    # HWIO
    b2 = 0.1 * jax.random.normal(kb2, (C2,), jnp.float32)

    out = convblock_forward(x, w1, b1, w2, b2)
    out = jax.block_until_ready(out)
    assert out.shape == (N, Cout, H, W), out.shape

    ref = jax.block_until_ready(_reference_convblock(x, w1, b1, w2, b2))
    assert jnp.allclose(out, ref, atol=1e-2, rtol=1e-2), (
        float(jnp.max(jnp.abs(out - ref))))

    print("KERNEL_OK")
</pallas_src>

<mosaic_0001>
module attributes {stable_mosaic.version = 11 : i64} {
  func.func @_convblock_kernel(%arg0: i32, %arg1: memref<1x4x256xf32, #tpu.memory_space<vmem>>, %arg2: memref<9x256xf32, #tpu.memory_space<vmem>>, %arg3: memref<8x36xf32, #tpu.memory_space<vmem>>, %arg4: memref<8x1xf32, #tpu.memory_space<vmem>>, %arg5: memref<8x72xf32, #tpu.memory_space<vmem>>, %arg6: memref<8x1xf32, #tpu.memory_space<vmem>>, %arg7: memref<1x8x256xf32, #tpu.memory_space<vmem>>) attributes {dimension_semantics = [#tpu.dimension_semantics<parallel>], iteration_bounds = array<i64: 2>, scalar_prefetch = 0 : i64, scratch_operands = 0 : i64, tpu.core_type = #tpu.core_type<tc>, window_params = [{transform_indices = @transform_0, window_bounds = array<i64: 1, 4, 256>}, {pipeline_mode = #tpu.pipeline_mode<synchronous>, transform_indices = @transform_1, window_bounds = array<i64: 9, 256>}, {pipeline_mode = #tpu.pipeline_mode<synchronous>, transform_indices = @transform_2, window_bounds = array<i64: 8, 36>}, {pipeline_mode = #tpu.pipeline_mode<synchronous>, transform_indices = @transform_3, window_bounds = array<i64: 8, 1>}, {pipeline_mode = #tpu.pipeline_mode<synchronous>, transform_indices = @transform_4, window_bounds = array<i64: 8, 72>}, {pipeline_mode = #tpu.pipeline_mode<synchronous>, transform_indices = @transform_5, window_bounds = array<i64: 8, 1>}, {transform_indices = @transform_6, window_bounds = array<i64: 1, 8, 256>}]} {
    %c0 = arith.constant 0 : index
    %c0_0 = arith.constant 0 : index
    %0 = vector.load %arg2[%c0, %c0_0] : memref<9x256xf32, #tpu.memory_space<vmem>>, vector<9x256xf32>
    %c0_1 = arith.constant 0 : index
    %c0_2 = arith.constant 0 : index
    %c0_3 = arith.constant 0 : index
    %1 = vector.load %arg1[%c0_1, %c0_2, %c0_3] : memref<1x4x256xf32, #tpu.memory_space<vmem>>, vector<1x4x256xf32>
    %2 = vector.shape_cast %1 : vector<1x4x256xf32> to vector<4x256xf32>
    %c17_i32 = arith.constant 17 : i32
    %3 = tpu.dynamic_rotate %2 by %c17_i32 dim 1 : vector<4x256xf32>, i32 -> vector<4x256xf32>
    %4 = vector.extract_strided_slice %0 {offsets = [0, 0], sizes = [1, 256], strides = [1, 1]} : vector<9x256xf32> to vector<1x256xf32>
    %5 = vector.broadcast %4 : vector<1x256xf32> to vector<4x256xf32>
    %6 = arith.mulf %3, %5 : vector<4x256xf32>
    %c16_i32 = arith.constant 16 : i32
    %7 = tpu.dynamic_rotate %2 by %c16_i32 dim 1 : vector<4x256xf32>, i32 -> vector<4x256xf32>
    %8 = vector.extract_strided_slice %0 {offsets = [1, 0], sizes = [1, 256], strides = [1, 1]} : vector<9x256xf32> to vector<1x256xf32>
    %9 = vector.broadcast %8 : vector<1x256xf32> to vector<4x256xf32>
    %10 = arith.mulf %7, %9 : vector<4x256xf32>
    %c15_i32 = arith.constant 15 : i32
    %11 = tpu.dynamic_rotate %2 by %c15_i32 dim 1 : vector<4x256xf32>, i32 -> vector<4x256xf32>
    %12 = vector.extract_strided_slice %0 {offsets = [2, 0], sizes = [1, 256], strides = [1, 1]} : vector<9x256xf32> to vector<1x256xf32>
    %13 = vector.broadcast %12 : vector<1x256xf32> to vector<4x256xf32>
    %14 = arith.mulf %11, %13 : vector<4x256xf32>
    %c1_i32 = arith.constant 1 : i32
    %15 = tpu.dynamic_rotate %2 by %c1_i32 dim 1 : vector<4x256xf32>, i32 -> vector<4x256xf32>
    %16 = vector.extract_strided_slice %0 {offsets = [3, 0], sizes = [1, 256], strides = [1, 1]} : vector<9x256xf32> to vector<1x256xf32>
    %17 = vector.broadcast %16 : vector<1x256xf32> to vector<4x256xf32>
    %18 = arith.mulf %15, %17 : vector<4x256xf32>
    %c255_i32 = arith.constant 255 : i32
    %19 = tpu.dynamic_rotate %2 by %c255_i32 dim 1 : vector<4x256xf32>, i32 -> vector<4x256xf32>
    %20 = vector.extract_strided_slice %0 {offsets = [5, 0], sizes = [1, 256], strides = [1, 1]} : vector<9x256xf32> to vector<1x256xf32>
    %21 = vector.broadcast %20 : vector<1x256xf32> to vector<4x256xf32>
    %22 = arith.mulf %19, %21 : vector<4x256xf32>
    %c241_i32 = arith.constant 241 : i32
    %23 = tpu.dynamic_rotate %2 by %c241_i32 dim 1 : vector<4x256xf32>, i32 -> vector<4x256xf32>
    %24 = vector.extract_strided_slice %0 {offsets = [6, 0], sizes = [1, 256], strides = [1, 1]} : vector<9x256xf32> to vector<1x256xf32>
    %25 = vector.broadcast %24 : vector<1x256xf32> to vector<4x256xf32>
    %26 = arith.mulf %23, %25 : vector<4x256xf32>
    %c240_i32 = arith.constant 240 : i32
    %27 = tpu.dynamic_rotate %2 by %c240_i32 dim 1 : vector<4x256xf32>, i32 -> vector<4x256xf32>
    %28 = vector.extract_strided_slice %0 {offsets = [7, 0], sizes = [1, 256], strides = [1, 1]} : vector<9x256xf32> to vector<1x256xf32>
    %29 = vector.broadcast %28 : vector<1x256xf32> to vector<4x256xf32>
    %30 = arith.mulf %27, %29 : vector<4x256xf32>
    %c239_i32 = arith.constant 239 : i32
    %31 = tpu.dynamic_rotate %2 by %c239_i32 dim 1 : vector<4x256xf32>, i32 -> vector<4x256xf32>
    %32 = vector.extract_strided_slice %0 {offsets = [8, 0], sizes = [1, 256], strides = [1, 1]} : vector<9x256xf32> to vector<1x256xf32>
    %33 = vector.broadcast %32 : vector<1x256xf32> to vector<4x256xf32>
    %34 = arith.mulf %31, %33 : vector<4x256xf32>
    %35 = tpu.concatenate %6, %10, %14, %18, %2, %22, %26, %30, %34 in 0 : vector<4x256xf32>, vector<4x256xf32>, vector<4x256xf32>, vector<4x256xf32>, vector<4x256xf32>, vector<4x256xf32>, vector<4x256xf32>, vector<4x256xf32>, vector<4x256xf32> -> vector<36x256xf32>
    %c0_4 = arith.constant 0 : index
    %c0_5 = arith.constant 0 : index
    %36 = vector.load %arg3[%c0_4, %c0_5] : memref<8x36xf32, #tpu.memory_space<vmem>>, vector<8x36xf32>
    %cst = arith.constant dense<0.000000e+00> : vector<8x256xf32>
    %37 = tpu.matmul %36, %35, %cst {dimension_numbers = #tpu.dot_dimension_numbers<[1], [0], [0], [1], [0, 0, 1, 1], [], []>} : vector<8x36xf32>, vector<36x256xf32>, vector<8x256xf32> -> vector<8x256xf32>
    %c0_6 = arith.constant 0 : index
    %c0_7 = arith.constant 0 : index
    %38 = vector.load %arg4[%c0_6, %c0_7] : memref<8x1xf32, #tpu.memory_space<vmem>>, vector<8x1xf32>
    %39 = vector.broadcast %38 : vector<8x1xf32> to vector<8x256xf32>
    %40 = arith.addf %37, %39 : vector<8x256xf32>
    %cst_8 = arith.constant dense<0.000000e+00> : vector<8xf32>
    %41 = vector.multi_reduction <add>, %40, %cst_8 [1] : vector<8x256xf32> to vector<8xf32>
    %42 = vector.shape_cast %41 : vector<8xf32> to vector<8x1xf32>
    %cst_9 = arith.constant 3.906250e-03 : f32
    %43 = vector.broadcast %cst_9 : f32 to vector<8x1xf32>
    %44 = arith.mulf %42, %43 : vector<8x1xf32>
    %45 = arith.mulf %40, %40 : vector<8x256xf32>
    %cst_10 = arith.constant dense<0.000000e+00> : vector<8xf32>
    %46 = vector.multi_reduction <add>, %45, %cst_10 [1] : vector<8x256xf32> to vector<8xf32>
    %47 = vector.shape_cast %46 : vector<8xf32> to vector<8x1xf32>
    %cst_11 = arith.constant 3.906250e-03 : f32
    %48 = vector.broadcast %cst_11 : f32 to vector<8x1xf32>
    %49 = arith.mulf %47, %48 : vector<8x1xf32>
    %50 = arith.mulf %44, %44 : vector<8x1xf32>
    %51 = arith.subf %49, %50 : vector<8x1xf32>
    %52 = vector.broadcast %44 : vector<8x1xf32> to vector<8x256xf32>
    %53 = arith.subf %40, %52 : vector<8x256xf32>
    %cst_12 = arith.constant 9.99999974E-6 : f32
    %54 = vector.broadcast %cst_12 : f32 to vector<8x1xf32>
    %55 = arith.addf %51, %54 : vector<8x1xf32>
    %56 = math.rsqrt %55 : vector<8x1xf32>
    %57 = vector.broadcast %56 : vector<8x1xf32> to vector<8x256xf32>
    %58 = arith.mulf %53, %57 : vector<8x256xf32>
    %cst_13 = arith.constant 0.000000e+00 : f32
    %59 = vector.broadcast %cst_13 : f32 to vector<8x256xf32>
    %60 = arith.maximumf %58, %59 : vector<8x256xf32>
    %c17_i32_14 = arith.constant 17 : i32
    %61 = tpu.dynamic_rotate %60 by %c17_i32_14 dim 1 : vector<8x256xf32>, i32 -> vector<8x256xf32>
    %62 = vector.extract_strided_slice %0 {offsets = [0, 0], sizes = [1, 256], strides = [1, 1]} : vector<9x256xf32> to vector<1x256xf32>
    %63 = vector.broadcast %62 : vector<1x256xf32> to vector<8x256xf32>
    %64 = arith.mulf %61, %63 : vector<8x256xf32>
    %c16_i32_15 = arith.constant 16 : i32
    %65 = tpu.dynamic_rotate %60 by %c16_i32_15 dim 1 : vector<8x256xf32>, i32 -> vector<8x256xf32>
    %66 = vector.extract_strided_slice %0 {offsets = [1, 0], sizes = [1, 256], strides = [1, 1]} : vector<9x256xf32> to vector<1x256xf32>
    %67 = vector.broadcast %66 : vector<1x256xf32> to vector<8x256xf32>
    %68 = arith.mulf %65, %67 : vector<8x256xf32>
    %c15_i32_16 = arith.constant 15 : i32
    %69 = tpu.dynamic_rotate %60 by %c15_i32_16 dim 1 : vector<8x256xf32>, i32 -> vector<8x256xf32>
    %70 = vector.extract_strided_slice %0 {offsets = [2, 0], sizes = [1, 256], strides = [1, 1]} : vector<9x256xf32> to vector<1x256xf32>
    %71 = vector.broadcast %70 : vector<1x256xf32> to vector<8x256xf32>
    %72 = arith.mulf %69, %71 : vector<8x256xf32>
    %c1_i32_17 = arith.constant 1 : i32
    %73 = tpu.dynamic_rotate %60 by %c1_i32_17 dim 1 : vector<8x256xf32>, i32 -> vector<8x256xf32>
    %74 = vector.extract_strided_slice %0 {offsets = [3, 0], sizes = [1, 256], strides = [1, 1]} : vector<9x256xf32> to vector<1x256xf32>
    %75 = vector.broadcast %74 : vector<1x256xf32> to vector<8x256xf32>
    %76 = arith.mulf %73, %75 : vector<8x256xf32>
    %c255_i32_18 = arith.constant 255 : i32
    %77 = tpu.dynamic_rotate %60 by %c255_i32_18 dim 1 : vector<8x256xf32>, i32 -> vector<8x256xf32>
    %78 = vector.extract_strided_slice %0 {offsets = [5, 0], sizes = [1, 256], strides = [1, 1]} : vector<9x256xf32> to vector<1x256xf32>
    %79 = vector.broadcast %78 : vector<1x256xf32> to vector<8x256xf32>
    %80 = arith.mulf %77, %79 : vector<8x256xf32>
    %c241_i32_19 = arith.constant 241 : i32
    %81 = tpu.dynamic_rotate %60 by %c241_i32_19 dim 1 : vector<8x256xf32>, i32 -> vector<8x256xf32>
    %82 = vector.extract_strided_slice %0 {offsets = [6, 0], sizes = [1, 256], strides = [1, 1]} : vector<9x256xf32> to vector<1x256xf32>
    %83 = vector.broadcast %82 : vector<1x256xf32> to vector<8x256xf32>
    %84 = arith.mulf %81, %83 : vector<8x256xf32>
    %c240_i32_20 = arith.constant 240 : i32
    %85 = tpu.dynamic_rotate %60 by %c240_i32_20 dim 1 : vector<8x256xf32>, i32 -> vector<8x256xf32>
    %86 = vector.extract_strided_slice %0 {offsets = [7, 0], sizes = [1, 256], strides = [1, 1]} : vector<9x256xf32> to vector<1x256xf32>
    %87 = vector.broadcast %86 : vector<1x256xf32> to vector<8x256xf32>
    %88 = arith.mulf %85, %87 : vector<8x256xf32>
    %c239_i32_21 = arith.constant 239 : i32
    %89 = tpu.dynamic_rotate %60 by %c239_i32_21 dim 1 : vector<8x256xf32>, i32 -> vector<8x256xf32>
    %90 = vector.extract_strided_slice %0 {offsets = [8, 0], sizes = [1, 256], strides = [1, 1]} : vector<9x256xf32> to vector<1x256xf32>
    %91 = vector.broadcast %90 : vector<1x256xf32> to vector<8x256xf32>
    %92 = arith.mulf %89, %91 : vector<8x256xf32>
    %93 = tpu.concatenate %64, %68, %72, %76, %60, %80, %84, %88, %92 in 0 : vector<8x256xf32>, vector<8x256xf32>, vector<8x256xf32>, vector<8x256xf32>, vector<8x256xf32>, vector<8x256xf32>, vector<8x256xf32>, vector<8x256xf32>, vector<8x256xf32> -> vector<72x256xf32>
    %c0_22 = arith.constant 0 : index
    %c0_23 = arith.constant 0 : index
    %94 = vector.load %arg5[%c0_22, %c0_23] : memref<8x72xf32, #tpu.memory_space<vmem>>, vector<8x72xf32>
    %cst_24 = arith.constant dense<0.000000e+00> : vector<8x256xf32>
    %95 = tpu.matmul %94, %93, %cst_24 {dimension_numbers = #tpu.dot_dimension_numbers<[1], [0], [0], [1], [0, 0, 1, 1], [], []>} : vector<8x72xf32>, vector<72x256xf32>, vector<8x256xf32> -> vector<8x256xf32>
    %c0_25 = arith.constant 0 : index
    %c0_26 = arith.constant 0 : index
    %96 = vector.load %arg6[%c0_25, %c0_26] : memref<8x1xf32, #tpu.memory_space<vmem>>, vector<8x1xf32>
    %97 = vector.broadcast %96 : vector<8x1xf32> to vector<8x256xf32>
    %98 = arith.addf %95, %97 : vector<8x256xf32>
    %cst_27 = arith.constant dense<0.000000e+00> : vector<8xf32>
    %99 = vector.multi_reduction <add>, %98, %cst_27 [1] : vector<8x256xf32> to vector<8xf32>
    %100 = vector.shape_cast %99 : vector<8xf32> to vector<8x1xf32>
    %cst_28 = arith.constant 3.906250e-03 : f32
    %101 = vector.broadcast %cst_28 : f32 to vector<8x1xf32>
    %102 = arith.mulf %100, %101 : vector<8x1xf32>
    %103 = arith.mulf %98, %98 : vector<8x256xf32>
    %cst_29 = arith.constant dense<0.000000e+00> : vector<8xf32>
    %104 = vector.multi_reduction <add>, %103, %cst_29 [1] : vector<8x256xf32> to vector<8xf32>
    %105 = vector.shape_cast %104 : vector<8xf32> to vector<8x1xf32>
    %cst_30 = arith.constant 3.906250e-03 : f32
    %106 = vector.broadcast %cst_30 : f32 to vector<8x1xf32>
    %107 = arith.mulf %105, %106 : vector<8x1xf32>
    %108 = arith.mulf %102, %102 : vector<8x1xf32>
    %109 = arith.subf %107, %108 : vector<8x1xf32>
    %110 = vector.broadcast %102 : vector<8x1xf32> to vector<8x256xf32>
    %111 = arith.subf %98, %110 : vector<8x256xf32>
    %cst_31 = arith.constant 9.99999974E-6 : f32
    %112 = vector.broadcast %cst_31 : f32 to vector<8x1xf32>
    %113 = arith.addf %109, %112 : vector<8x1xf32>
    %114 = math.rsqrt %113 : vector<8x1xf32>
    %115 = vector.broadcast %114 : vector<8x1xf32> to vector<8x256xf32>
    %116 = arith.mulf %111, %115 : vector<8x256xf32>
    %cst_32 = arith.constant 0.000000e+00 : f32
    %117 = vector.broadcast %cst_32 : f32 to vector<8x256xf32>
    %118 = arith.maximumf %116, %117 : vector<8x256xf32>
    %c0_33 = arith.constant 0 : index
    %c0_34 = arith.constant 0 : index
    %c0_35 = arith.constant 0 : index
    %119 = vector.load %arg7[%c0_33, %c0_34, %c0_35] : memref<1x8x256xf32, #tpu.memory_space<vmem>>, vector<1x8x256xf32>
    %120 = vector.shape_cast %119 : vector<1x8x256xf32> to vector<8x256xf32>
    %121 = vector.shape_cast %118 : vector<8x256xf32> to vector<1x8x256xf32>
    tpu.vector_store %arg7[%c0_33, %c0_34, %c0_35], %121 {strides = array<i32>} : memref<1x8x256xf32, #tpu.memory_space<vmem>>, vector<1x8x256xf32>,
    return
  }
  func.func @transform_0(%arg0: i32) -> (i32, i32, i32) {
    %c0_i32 = arith.constant 0 : i32
    %c0_i32_0 = arith.constant 0 : i32
    %c0_i32_1 = arith.constant 0 : i32
    return %arg0, %c0_i32, %c0_i32_0 : i32, i32, i32
  }
  func.func @transform_1(%arg0: i32) -> (i32, i32) {
    %c0_i32 = arith.constant 0 : i32
    %c0_i32_0 = arith.constant 0 : i32
    %c0_i32_1 = arith.constant 0 : i32
    return %c0_i32, %c0_i32_0 : i32, i32
  }
  func.func @transform_2(%arg0: i32) -> (i32, i32) {
    %c0_i32 = arith.constant 0 : i32
    %c0_i32_0 = arith.constant 0 : i32
    %c0_i32_1 = arith.constant 0 : i32
    return %c0_i32, %c0_i32_0 : i32, i32
  }
  func.func @transform_3(%arg0: i32) -> (i32, i32) {
    %c0_i32 = arith.constant 0 : i32
    %c0_i32_0 = arith.constant 0 : i32
    %c0_i32_1 = arith.constant 0 : i32
    return %c0_i32, %c0_i32_0 : i32, i32
  }
  func.func @transform_4(%arg0: i32) -> (i32, i32) {
    %c0_i32 = arith.constant 0 : i32
    %c0_i32_0 = arith.constant 0 : i32
    %c0_i32_1 = arith.constant 0 : i32
    return %c0_i32, %c0_i32_0 : i32, i32
  }
  func.func @transform_5(%arg0: i32) -> (i32, i32) {
    %c0_i32 = arith.constant 0 : i32
    %c0_i32_0 = arith.constant 0 : i32
    %c0_i32_1 = arith.constant 0 : i32
    return %c0_i32, %c0_i32_0 : i32, i32
  }
  func.func @transform_6(%arg0: i32) -> (i32, i32, i32) {
    %c0_i32 = arith.constant 0 : i32
    %c0_i32_0 = arith.constant 0 : i32
    %c0_i32_1 = arith.constant 0 : i32
    return %arg0, %c0_i32, %c0_i32_0 : i32, i32, i32
  }
}

</mosaic_0001>

<bundles_post_ra>
// kernel: convblock_forward.1
= control target key start
LH: loop header
LB: loop body
LE: loop exit
PB: predicated region body
PF: predicated region fallthrough
CT: control target
= control target key end

     0   :  { %s882_s21 = smov 0   ;;  %s1169_s0 = inlined_call_operand.vmem [shape: f32[2,4,256], index: 0, kind: input, shape index: {}]   ;;  %s1170_s1 = inlined_call_operand.vmem [shape: f32[9,256], index: 1, kind: input, shape index: {}]   ;;  %s1171_s2 = inlined_call_operand.vmem [shape: f32[8,36], index: 2, kind: input, shape index: {}]   ;;  %s1172_s3 = inlined_call_operand.vmem [shape: f32[8,1], index: 3, kind: input, shape index: {}]   ;;  %s1173_s4 = inlined_call_operand.vmem [shape: f32[8,72], index: 4, kind: input, shape index: {}]   ;;  %s1174_s5 = inlined_call_operand.vmem [shape: f32[8,1], index: 5, kind: input, shape index: {}]   ;;  %s1175_s6 = inlined_call_operand.vmem [shape: f32[2,8,256], index: 6, kind: output, shape index: {}]  }
   0x1 LB: > { %s762_s22 = sadd.s32 4294967295, %s835_s21   ;;  %p766_p0 = scmp.ge.s32.totalorder %s835_s21, 1  ;;  %s835_s21 = sphi %s882_s21, %s16_s21  }
   0x2   : > { %p212_p1 = scmp.lt.s32.totalorder %s835_s21, 3 }
   0x4   : > { %p213_p2 = pnand %p766_p0, %p212_p1 }
   0x5   : > { %p242_p3 = scmp.lt.s32.totalorder (!%p213_p2), %s762_s22, 1  ;;  %s837_s27 = smov (!%p213_p2), 1   ;;  %v843_v2 = vmov (!%p213_p2), 0.0   ;;  %v845_v3 = vmov (!%p213_p2), 0   ;;  %v432_v4 = vld [vmem:[%s1172_s3] sm:$0xff] (!%p213_p2)  ;;  %v264_v5 = vlaneseq (!%p213_p2)  ;;  %v950_v12 = vld [vmem:[%s1170_s1 + $0x8] sm:$0xff] (!%p213_p2) }
   0x6   : > { %216 = sbr.rel (%p213_p2) target bundleno = 1087 (0x43f), region = 44  ;;  %s838_s28 = smov (!%p213_p2), 16   ;;  %512 = vmatprep.mubr.f32.mxu0 (!%p213_p2), %v843_v2  ;;  %678 = vmatprep.mubr.f32.mxu1 (!%p213_p2), %v843_v2  ;;  %v945_v11 = vld [vmem:[%s1170_s1] sm:$0xff] (!%p213_p2)  ;;  %vm422_vm4 = vcmask (!%p213_p2), 1043456   ;;  %vm438_vm9 = vcmask (!%p213_p2), 293888   ;;  %vm610_vm10 = vcmask (!%p213_p2), 588800  }
   0x7   : > { %s839_s29 = smov (!%p213_p2), 17   ;;  %s840_s30 = smov (!%p213_p2), 15   ;;  %823 = vset.pattern.permute.xlu0 (!%p213_p2), %v845_v3  ;;  %v937_v6 = vshrl.u32 (!%p213_p2), %v264_v5, 7  ;;  %v939_v7 = vand.u32 (!%p213_p2), 127, %v264_v5 }
   0x8   : > { %s841_s7 = smov (!%p213_p2), 127   ;;  %s842_s8 = smov (!%p213_p2), 112  }
   0x9   : > { %s844_s9 = smov (!%p213_p2), 113   ;;  %s846_s10 = smov (!%p213_p2), 111   ;;  %v322_v10 = vsub.s32 (!%p213_p2), 3, %v937_v6  ;;  %v288_v13 = vsub.s32 (!%p213_p2), 1, %v937_v6  ;;  %vm317_vm0 = vcmp.lt.s32.totalorder (!%p213_p2), %v939_v7, 1  ;;  %v271_v16 = vsub.s32 (!%p213_p2), 0, %v937_v6 }
   0xa   : > { %vm283_vm1 = vcmp.lt.s32.totalorder (!%p213_p2), %v939_v7, 16  ;;  %v305_v19 = vsub.s32 (!%p213_p2), 2, %v937_v6  ;;  %vm266_vm2 = vcmp.lt.s32.totalorder (!%p213_p2), %v939_v7, 17  ;;  %vm300_vm3 = vcmp.lt.s32.totalorder (!%p213_p2), %v939_v7, 15 }
   0xb   : > { %v956_v17 = vrot.slane (!%p213_p2), %v945_v11, %v322_v10  ;;  %v959_v18 = vrot.slane (!%p213_p2), %v950_v12, %v322_v10  ;;  %v968_v22 = vrot.slane (!%p213_p2), %v945_v11, %v288_v13  ;;  %v971_v23 = vrot.slane (!%p213_p2), %v950_v12, %v288_v13 }
   0xc   : > { %v975_v24 = vrot.slane (!%p213_p2), %v945_v11, %v271_v16  ;;  %v978_v25 = vrot.slane (!%p213_p2), %v950_v12, %v271_v16  ;;  %v990_v34 = vrot.slane (!%p213_p2), %v945_v11, %v305_v19  ;;  %v993_v35 = vrot.slane (!%p213_p2), %v950_v12, %v305_v19 }
   0xd   : > { %s1177_s22 = smov (!%p242_p3, %s762_s22), 1  ;;  %v339_v38 = vsub.s32 5, %v937_v6  ;;  %vm334_vm5 = vcmp.lt.s32.totalorder %v939_v7, 127  ;;  %v373_v43 = vsub.s32 7, %v937_v6  ;;  %vm368_vm6 = vcmp.lt.s32.totalorder %v939_v7, 112 }
   0xe   : > { %s779_s23 = sshll.u32 %s1177_s22, 3  ;;  %vm351_vm7 = vcmp.lt.s32.totalorder %v939_v7, 113  ;;  %vm385_vm8 = vcmp.lt.s32.totalorder %v939_v7, 111 }
   0xf   : > { %s246_s26 = scalar_lea.vmem %s1169_s0, %s779_s23  ;;  %v1011_v52 = vrot.slane %v945_v11, %v339_v38  ;;  %v1014_v53 = vrot.slane %v950_v12, %v339_v38  ;;  %v1026_v2 = vrot.slane %v945_v11, %v373_v43  ;;  %v1029_v3 = vrot.slane %v950_v12, %v373_v43 }
  0x10   : > { %v896_v0 = vld [vmem:[%s246_s26] sm:$0xff] }
  0x11   : > { %313 = vrot.lane.b32.xlu1 %v896_v0, %s837_s27  ;;  %279 = vrot.lane.b32.xlu0 %v896_v0, %s838_s28  ;;  %v904_v1 = vcombine.high %v896_v0, %v896_v0 }
  0x15   : > { %260 = vrot.lane.b32.xlu0 %v896_v0, %s839_s29  ;;  %315 = vrot.lane.b32.xlu1 %v904_v1, %s837_s27 }
  0x19   : > { %262 = vrot.lane.b32.xlu1 %v904_v1, %s839_s29  ;;  %281 = vrot.lane.b32.xlu0 %v904_v1, %s838_s28 }
  0x1d   : > { %298 = vrot.lane.b32.xlu1 %v904_v1, %s840_s30  ;;  %296 = vrot.lane.b32.xlu0 %v896_v0, %s840_s30 }
  0x21   : > { %332 = vrot.lane.b32.xlu1 %v904_v1, %s841_s7  ;;  %330 = vrot.lane.b32.xlu0 %v896_v0, %s841_s7 }
  0x25   : > { %366 = vrot.lane.b32.xlu1 %v904_v1, %s842_s8  ;;  %364 = vrot.lane.b32.xlu0 %v896_v0, %s842_s8 }
  0x29   : > { %349 = vrot.lane.b32.xlu1 %v904_v1, %s844_s9  ;;  %347 = vrot.lane.b32.xlu0 %v896_v0, %s844_s9 }
  0x2d   : > { %383 = vrot.lane.b32.xlu1 %v904_v1, %s846_s10  ;;  %381 = vrot.lane.b32.xlu0 %v896_v0, %s846_s10 }
  0x31   : > { %435 = vperm.xlu0 %823, %v432_v4   ;;  %v356_v4 = vsub.s32 6, %v937_v6 }
  0x33   : > { %v1042_v16 = vrot.slane %v945_v11, %v356_v4  ;;  %v1045_v19 = vrot.slane %v950_v12, %v356_v4  ;;  %v1057_v12 = vld [vmem:[%s1170_s1 + $0x18] ss:$0 sm:$0xff] }
  0x83   : > { %v314_v8 = vpop.permute.xlu1 %313  ;;  %v280_v9 = vpop.permute.xlu0 %279 }
  0x87   : > { %v261_v14 = vpop.permute.xlu0 %260  ;;  %v316_v15 = vpop.permute.xlu1 %315 }
  0x88   : > { %v318_v20 = vsel %vm317_vm0, %v314_v8, %v316_v15  ;;  %v319_v21 = vsel %vm317_vm0, %v316_v15, %v314_v8 }
  0x89   : > { %v328_v28 = vmul.f32 %v956_v17, %v319_v21  ;;  %v329_v29 = vmul.f32 %v959_v18, %v318_v20 }
  0x8b   : > { %v263_v26 = vpop.permute.xlu1 %262  ;;  %v282_v27 = vpop.permute.xlu0 %281  ;;  %v406_v44 = vrot.slane %v328_v28, 4  ;;  %v407_v45 = vrot.slane %v329_v29, 4 }
  0x8c   : > { %v284_v30 = vsel %vm283_vm1, %v280_v9, %v282_v27  ;;  %v285_v31 = vsel %vm283_vm1, %v282_v27, %v280_v9  ;;  %v267_v36 = vsel %vm266_vm2, %v261_v14, %v263_v26  ;;  %v268_v37 = vsel %vm266_vm2, %v263_v26, %v261_v14 }
  0x8d   : > { %v294_v32 = vmul.f32 %v968_v22, %v285_v31  ;;  %v295_v33 = vmul.f32 %v971_v23, %v284_v30  ;;  %v277_v48 = vmul.f32 %v975_v24, %v268_v37  ;;  %v278_v49 = vmul.f32 %v978_v25, %v267_v36 }
  0x8f   : > { %v400_v39 = vrot.slane %v294_v32, 4  ;;  %v401_v40 = vrot.slane %v295_v33, 4  ;;  %v299_v41 = vpop.permute.xlu1 %298  ;;  %v297_v42 = vpop.permute.xlu0 %296 }
  0x90   : > { %v301_v46 = vsel %vm300_vm3, %v297_v42, %v299_v41  ;;  %v302_v47 = vsel %vm300_vm3, %v299_v41, %v297_v42  ;;  %v1068_v42 = vld [vmem:[%s1170_s1 + $0x10] ss:$0 sm:$0xff] }
  0x91   : > { %v311_v50 = vmul.f32 %v990_v34, %v302_v47  ;;  %v312_v51 = vmul.f32 %v993_v35, %v301_v46  ;;  %v424_v56 = vsel %vm422_vm4, %v278_v49, %v401_v40  ;;  %v423_v58 = vsel %vm422_vm4, %v277_v48, %v400_v39  ;;  %v431_v46 = vld [vmem:[%s1171_s2] sm:$0xff] }
  0x93   : > { %v333_v54 = vpop.permute.xlu1 %332  ;;  %v331_v55 = vpop.permute.xlu0 %330  ;;  %v426_v57 = vsel %vm422_vm4, %v312_v51, %v407_v45  ;;  %v425_v59 = vsel %vm422_vm4, %v311_v50, %v406_v44 }
  0x94   : > { %v335_v60 = vsel %vm334_vm5, %v331_v55, %v333_v54  ;;  %v336_v61 = vsel %vm334_vm5, %v333_v54, %v331_v55  ;;  %v781_v62 = vpack.c.bf16 %v426_v57, %v424_v56  ;;  %v783_v63 = vpack.c.bf16 %v425_v59, %v423_v58 }
  0x95   : > { %v345_v5 = vmul.f32 %v1011_v52, %v335_v60  ;;  %v346_v8 = vmul.f32 %v1014_v53, %v336_v61 }
  0x96   : > { %782 = vmatprep.subr.bf16.mxu0 %v781_v62 }
  0x97   : > { %v367_v9 = vpop.permute.xlu1 %366  ;;  %784 = vmatpush1.bf16.msra.mxu0 %v783_v63  ;;  %v365_v10 = vpop.permute.xlu0 %364  ;;  %v412_v20 = vrot.slane %v345_v5, 4  ;;  %v413_v21 = vrot.slane %v346_v8, 4 }
  0x98   : > { %v369_v13 = vsel %vm368_vm6, %v365_v10, %v367_v9  ;;  %v370_v14 = vsel %vm368_vm6, %v367_v9, %v365_v10 }
  0x99   : > { %v379_v15 = vmul.f32 %v1026_v2, %v369_v13  ;;  %v380_v6 = vmul.f32 %v1029_v3, %v370_v14  ;;  %v428_v36 = vsel %vm422_vm4, %v904_v1, %v413_v21  ;;  %v427_v39 = vsel %vm422_vm4, %v896_v0, %v412_v20 }
  0x9b   : > { %v350_v26 = vpop.permute.xlu1 %349  ;;  %v348_v27 = vpop.permute.xlu0 %347  ;;  %v418_v30 = vrot.slane %v379_v15, 4  ;;  %v419_v31 = vrot.slane %v380_v6, 4  ;;  %v604_v6 = vld [vmem:[%s1174_s5] sm:$0xff] }
  0x9c   : > { %v352_v28 = vsel %vm351_vm7, %v348_v27, %v350_v26  ;;  %v353_v29 = vsel %vm351_vm7, %v350_v26, %v348_v27 }
  0x9d   : > { %v362_v11 = vmul.f32 %v1042_v16, %v352_v28  ;;  %v363_v32 = vmul.f32 %v1045_v19, %v353_v29 }
  0x9f   : > { %v384_v33 = vpop.permute.xlu1 %383  ;;  %v430_v37 = vsel %vm422_vm4, %v363_v32, %v419_v31  ;;  %v382_v38 = vpop.permute.xlu0 %381  ;;  %v429_v40 = vsel %vm422_vm4, %v362_v11, %v418_v30 }
  0xa0   : > { %v785_v41 = vpack.c.bf16 %v430_v37, %v428_v36  ;;  %v386_v43 = vsel %vm385_vm8, %v382_v38, %v384_v33  ;;  %v387_v1 = vsel %vm385_vm8, %v384_v33, %v382_v38  ;;  %v787_v44 = vpack.c.bf16 %v429_v40, %v427_v39 }
  0xa1   : > { %v397_v45 = vmul.f32 %v1057_v12, %v387_v1  ;;  %v396_v0 = vmul.f32 %v1068_v42, %v386_v43 }
  0xa2   : > { %786 = vmatprep.subr.bf16.mxu0 %v785_v41 }
  0xa3   : > { %788 = vmatpush1.bf16.msra.mxu0 %v787_v44 }
  0xa4   : > { %773 = vmatprep.subr.msk.mxu0 %vm422_vm4, %v397_v45 }
  0xa7   : > { %774 = vmatpush1.msk.msra.mxu0 %vm422_vm4, %v396_v0 }
  0xa8   : > { %775 = vmatmul.mubr.msk.f32.vlgmr.msra.gmra.mrb[0].mxu0 %vm438_vm9, %v431_v46 }
  0xb0   : > { %v436_v47 = vpop.permute.xlu0 %435 }
 0x17b   : > { %v514_v48 = vpop.f32.mrb[0].mxu0 }
 0x17c   : > { %v515_v49 = vadd.f32 %v514_v48, %v436_v47  ;;  %v516_v50 = vpop.f32.mrb[1].mxu0 }
 0x17d   : > { %v517_v51 = vadd.f32 %v516_v50, %v436_v47 }
 0x17e   : > { %v523_v54 = vmul.f32 %v515_v49, %v515_v49 }
 0x17f   : > { %v519_v55 = vadd.f32 %v517_v51, %v515_v49  ;;  %v524_v56 = vmul.f32 %v517_v51, %v517_v51 }
 0x181   : > { %520 = vadd.xlane.f32.xlu1 %v519_v55  ;;  %v525_v57 = vadd.f32 %v524_v56, %v523_v54 }
 0x183   : > { %526 = vadd.xlane.f32.xlu0 %v525_v57 }
 0x20e   : > { %v521_v58 = vpop.xlane.xlu1 %520 }
 0x20f   : > { %v522_v59 = vmul.f32 0.00390625, %v521_v58 }
 0x210   : > { %v527_v60 = vpop.xlane.xlu0 %526 }
 0x211   : > { %v528_v61 = vmul.f32 0.00390625, %v527_v60  ;;  %v529_v62 = vmul.f32 %v522_v59, %v522_v59  ;;  %v531_v5 = vsub.f32 %v515_v49, %v522_v59  ;;  %v532_v8 = vsub.f32 %v517_v51, %v522_v59 }
 0x213   : > { %v530_v63 = vsub.f32 %v528_v61, %v529_v62 }
 0x215   : > { %v533_v4 = vadd.f32 1e-05, %v530_v63 }
 0x217   : > { %825 = vrsqrt.f32 %v533_v4 }
 0x221   : > { %v826_v9 = vpop.eup %825 }
 0x222   : > { %v535_v10 = vmul.f32 %v826_v9, %v531_v5  ;;  %v536_v13 = vmul.f32 %v826_v9, %v532_v8 }
 0x224   : > { %v1081_v14 = vmax.f32 %v535_v10, 0.0  ;;  %v538_v15 = vmax.f32 %v536_v13, 0.0 }
 0x226   : > { %541 = vrot.lane.b32.xlu0 %v538_v15, %s839_s29  ;;  %539 = vrot.lane.b32.xlu1 %v1081_v14, %s839_s29  ;;  %s780_s29 = sshll.u32 %s1177_s22, 4 }
 0x22a   : > { %555 = vrot.lane.b32.xlu0 %v1081_v14, %s840_s30  ;;  %547 = vrot.lane.b32.xlu1 %v1081_v14, %s838_s28 }
 0x22e   : > { %563 = vrot.lane.b32.xlu0 %v1081_v14, %s837_s27  ;;  %549 = vrot.lane.b32.xlu1 %v538_v15, %s838_s28 }
 0x232   : > { %571 = vrot.lane.b32.xlu0 %v1081_v14, %s841_s7  ;;  %557 = vrot.lane.b32.xlu1 %v538_v15, %s840_s30 }
 0x236   : > { %579 = vrot.lane.b32.xlu0 %v1081_v14, %s844_s9  ;;  %565 = vrot.lane.b32.xlu1 %v538_v15, %s837_s27 }
 0x23a   : > { %587 = vrot.lane.b32.xlu0 %v1081_v14, %s842_s8  ;;  %573 = vrot.lane.b32.xlu1 %v538_v15, %s841_s7 }
 0x23e   : > { %595 = vrot.lane.b32.xlu0 %v1081_v14, %s846_s10  ;;  %581 = vrot.lane.b32.xlu1 %v538_v15, %s844_s9 }
 0x242   : > { %607 = vperm.xlu0 %823, %v604_v6   ;;  %589 = vrot.lane.b32.xlu1 %v538_v15, %s842_s8  ;;  %s251_s8 = scalar_lea.vmem %s1175_s6, %s780_s29 }
 0x246   : > { %597 = vrot.lane.b32.xlu1 %v538_v15, %s846_s10 }
 0x298   : > { %v542_v20 = vpop.permute.xlu0 %541  ;;  %v540_v21 = vpop.permute.xlu1 %539 }
 0x299   : > { %v543_v28 = vsel %vm266_vm2, %v540_v21, %v542_v20  ;;  %v544_v29 = vsel %vm266_vm2, %v542_v20, %v540_v21 }
 0x29a   : > { %v545_v33 = vmul.f32 %v544_v29, %v975_v24  ;;  %v546_v37 = vmul.f32 %v543_v28, %v978_v25 }
 0x29c   : > { %v556_v26 = vpop.permute.xlu0 %555  ;;  %v548_v27 = vpop.permute.xlu1 %547 }
 0x2a0   : > { %v564_v30 = vpop.permute.xlu0 %563  ;;  %v550_v31 = vpop.permute.xlu1 %549 }
 0x2a1   : > { %v551_v11 = vsel %vm283_vm1, %v548_v27, %v550_v31  ;;  %v552_v32 = vsel %vm283_vm1, %v550_v31, %v548_v27 }
 0x2a2   : > { %v553_v36 = vmul.f32 %v552_v32, %v968_v22  ;;  %v554_v38 = vmul.f32 %v551_v11, %v971_v23 }
 0x2a4   : > { %v558_v39 = vpop.permute.xlu1 %557  ;;  %v789_v40 = vpack.c.bf16 %v554_v38, %v546_v37  ;;  %v791_v41 = vpack.c.bf16 %v553_v36, %v545_v33  ;;  %v572_v43 = vpop.permute.xlu0 %571 }
 0x2a5   : > { %v559_v1 = vsel %vm300_vm3, %v556_v26, %v558_v39  ;;  %v560_v44 = vsel %vm300_vm3, %v558_v39, %v556_v26 }
 0x2a6   : > { %790 = vmatprep.subr.bf16.mxu1 %v789_v40  ;;  %v561_v23 = vmul.f32 %v560_v44, %v990_v34  ;;  %v562_v25 = vmul.f32 %v559_v1, %v993_v35 }
 0x2a7   : > { %792 = vmatpush1.bf16.msra.mxu1 %v791_v41 }
 0x2a8   : > { %v566_v45 = vpop.permute.xlu1 %565  ;;  %v580_v47 = vpop.permute.xlu0 %579 }
 0x2a9   : > { %v567_v22 = vsel %vm317_vm0, %v564_v30, %v566_v45  ;;  %v568_v24 = vsel %vm317_vm0, %v566_v45, %v564_v30 }
 0x2aa   : > { %v569_v0 = vmul.f32 %v568_v24, %v956_v17  ;;  %v570_v46 = vmul.f32 %v567_v22, %v959_v18 }
 0x2ac   : > { %v574_v48 = vpop.permute.xlu1 %573  ;;  %v793_v49 = vpack.c.bf16 %v570_v46, %v562_v25  ;;  %v795_v50 = vpack.c.bf16 %v569_v0, %v561_v23  ;;  %v588_v56 = vpop.permute.xlu0 %587 }
 0x2ad   : > { %v575_v51 = vsel %vm334_vm5, %v572_v43, %v574_v48  ;;  %v576_v54 = vsel %vm334_vm5, %v574_v48, %v572_v43 }
 0x2ae   : > { %v577_v55 = vmul.f32 %v575_v51, %v1011_v52  ;;  %v578_v34 = vmul.f32 %v576_v54, %v1014_v53  ;;  %794 = vmatprep.subr.bf16.mxu1 %v793_v49 }
 0x2af   : > { %796 = vmatpush1.bf16.msra.mxu1 %v795_v50 }
 0x2b0   : > { %v582_v35 = vpop.permute.xlu1 %581  ;;  %v797_v17 = vpack.c.bf16 %v578_v34, %v538_v15  ;;  %v799_v18 = vpack.c.bf16 %v577_v55, %v1081_v14  ;;  %v596_v4 = vpop.permute.xlu0 %595 }
 0x2b1   : > { %v583_v57 = vsel %vm351_vm7, %v580_v47, %v582_v35  ;;  %v584_v58 = vsel %vm351_vm7, %v582_v35, %v580_v47 }
 0x2b2   : > { %798 = vmatprep.subr.bf16.mxu1 %v797_v17  ;;  %v585_v60 = vmul.f32 %v583_v57, %v1042_v16  ;;  %v586_v61 = vmul.f32 %v584_v58, %v1045_v19 }
 0x2b3   : > { %800 = vmatpush1.bf16.msra.mxu1 %v799_v18 }
 0x2b4   : > { %v590_v59 = vpop.permute.xlu1 %589 }
 0x2b5   : > { %v591_v52 = vsel %vm368_vm6, %v588_v56, %v590_v59  ;;  %v592_v53 = vsel %vm368_vm6, %v590_v59, %v588_v56 }
 0x2b6   : > { %v593_v62 = vmul.f32 %v591_v52, %v1026_v2  ;;  %v594_v63 = vmul.f32 %v592_v53, %v1029_v3  ;;  %v603_v2 = vld [vmem:[%s1173_s4] sm:$0xff] }
 0x2b8   : > { %v598_v5 = vpop.permute.xlu1 %597  ;;  %v801_v8 = vpack.c.bf16 %v594_v63, %v586_v61  ;;  %v803_v9 = vpack.c.bf16 %v593_v62, %v585_v60 }
 0x2b9   : > { %v600_v10 = vsel %vm385_vm8, %v598_v5, %v596_v4  ;;  %v599_v13 = vsel %vm385_vm8, %v596_v4, %v598_v5 }
 0x2ba   : > { %v602_v14 = vmul.f32 %v1057_v12, %v600_v10  ;;  %802 = vmatprep.subr.bf16.mxu1 %v801_v8  ;;  %v601_v16 = vmul.f32 %v1068_v42, %v599_v13 }
 0x2bb   : > { %804 = vmatpush1.bf16.msra.mxu1 %v803_v9 }
 0x2bc   : > { %630 = vmatprep.subr.mxu1 %v602_v14 }
 0x2bf   : > { %631 = vmatpush1.msra.mxu1 %v601_v16 }
 0x2c0   : > { %776 = vmatmul.mubr.msk.f32.vlgmr.msra.gmra.mrb[0].mxu1 %vm610_vm10, %v603_v2 }
 0x2c1   : > { %v608_v3 = vpop.permute.xlu0 %607 }
 0x393   : > { %v680_v19 = vpop.f32.mrb[0].mxu1 }
 0x394   : > { %v681_v15 = vadd.f32 %v680_v19, %v608_v3  ;;  %v682_v6 = vpop.f32.mrb[1].mxu1 }
 0x395   : > { %v683_v7 = vadd.f32 %v682_v6, %v608_v3 }
 0x396   : > { %v689_v20 = vmul.f32 %v681_v15, %v681_v15 }
 0x397   : > { %v685_v12 = vadd.f32 %v683_v7, %v681_v15  ;;  %v690_v21 = vmul.f32 %v683_v7, %v683_v7 }
 0x399   : > { %686 = vadd.xlane.f32.xlu1 %v685_v12  ;;  %v691_v26 = vadd.f32 %v690_v21, %v689_v20 }
 0x39b   : > { %692 = vadd.xlane.f32.xlu0 %v691_v26 }
 0x426   : > { %v687_v42 = vpop.xlane.xlu1 %686 }
 0x427   : > { %v688_v27 = vmul.f32 0.00390625, %v687_v42 }
 0x428   : > { %v693_v28 = vpop.xlane.xlu0 %692 }
 0x429   : > { %v694_v29 = vmul.f32 0.00390625, %v693_v28  ;;  %v695_v30 = vmul.f32 %v688_v27, %v688_v27  ;;  %v697_v32 = vsub.f32 %v681_v15, %v688_v27  ;;  %v698_v33 = vsub.f32 %v683_v7, %v688_v27 }
 0x42b   : > { %v696_v31 = vsub.f32 %v694_v29, %v695_v30 }
 0x42d   : > { %v699_v11 = vadd.f32 1e-05, %v696_v31 }
 0x42f   : > { %827 = vrsqrt.f32 %v699_v11 }
 0x439   : > { %v828_v36 = vpop.eup %827 }
 0x43a   : > { %v701_v37 = vmul.f32 %v828_v36, %v697_v32  ;;  %v702_v38 = vmul.f32 %v828_v36, %v698_v33 }
 0x43c   : > { %v703_v39 = vmax.f32 %v701_v37, 0.0  ;;  %v704_v40 = vmax.f32 %v702_v38, 0.0 }
 0x43e   : > { %705 = vst [vmem:[%s251_s8] sm:$0xff] %v703_v39  ;;  %706 = vst [vmem:[%s251_s8 + $0x8] sm:$0xff] %v704_v40 }
 0x43f PF: > { %s16_s21 = sadd.s32 1, %s835_s21  }
 0x440   : > { %p13_p4 = scmp.ge.s32.totalorder %s16_s21, 4  }
 0x442   :  { %15 = sbr.rel (!%p13_p4) target bundleno = 1 (0x1), region = 74 }

</bundles_post_ra>
